<compile_context>
chip_gen: v7x
topology: tpu7x:2x2x1
jax: 0.10.0
libtpu: 0.0.40
codegen_flags: <defaults>
</compile_context>

<pallas_src>
import numpy as np
import jax
import jax.numpy as jnp
from jax.experimental import pallas as pl
from jax.experimental.pallas import tpu as pltpu


def _moe_kernel(x_ref, gates_ref, w1_ref, b1_ref, w2_ref, b2_ref, y_ref):
    E, H, Dpad = w2_ref.shape          # static
    tb = x_ref.shape[0]

    # ---- layer 1 for ALL experts in one lane-dense matmul: (tb, Din) @ (Din, E*H)
    h = jnp.dot(x_ref[...], w1_ref[...], preferred_element_type=jnp.float32)
    h = jnp.maximum(h + b1_ref[...], 0.0)                       # (tb, E*H) f32

    gates = gates_ref[...]                                      # (tb, E) f32

    # ---- layer 2 + SparseDispatcher.combine, statically unrolled over experts.
    # scale_coeff is already folded into W2 / b2 on the host, so
    #   out_e = h_e @ W2_e + b2_e  ==  scale_e * (relu(x@W1_e+b1_e) @ W2_e' + b2_e')
    combined = jnp.zeros((tb, Dpad), jnp.float32)
    for e in range(E):                                          # E is small & static
        h_e = h[:, e * H:(e + 1) * H].astype(w2_ref.dtype)      # (tb, H)
        out_e = jnp.dot(h_e, w2_ref[e], preferred_element_type=jnp.float32)
        out_e = out_e + b2_ref[e]                               # (tb, Dpad)
        # gates are 0 for non-selected experts, so this dense weighted sum
        # equals the sparse dispatch + combine.
        combined = combined + gates[:, e:e + 1] * jnp.exp(out_e)

    # combined[combined == 0] = eps; y = log(combined)
    eps = jnp.float32(np.finfo(np.float64).eps)
    combined = jnp.where(combined == 0.0, eps, combined)
    y_ref[...] = jnp.log(combined)


def moe_forward(x, params, k, *, param_dtype=jnp.float32):
    B, Din = x.shape
    E, _, H = params["w1"].shape
    Dout = params["w2"].shape[-1]
    Dpad = ((Dout + 127) // 128) * 128          # lane-dense output / accumulator

    # ---- noisy_top_k_gating (noisy_gating=False path), plain-JAX glue ----
    logits = x @ params["w_gate"]                               # (B, E)
    top_vals, top_idx = jax.lax.top_k(logits, k)                # torch takes k+1, keeps k
    top_gates = jax.nn.softmax(top_vals, axis=1)
    gates = jnp.zeros_like(logits).at[
        jnp.arange(B)[:, None], top_idx].set(top_gates)         # scatter

    # ---- host-side layout plumbing (one-time, outside the kernel) ----
    scale = params["scale"].reshape(E, 1, 1).astype(jnp.float32)
    # W1 -> (Din, E*H) so layer 1 is a single lane-dense matmul for all experts.
    w1_flat = jnp.transpose(params["w1"], (1, 0, 2)).reshape(Din, E * H)
    b1_flat = params["b1"].reshape(1, E * H).astype(jnp.float32)
    # fold scale_coeff into W2 / b2, pad output dim to a multiple of 128.
    w2_s = params["w2"] * scale
    b2_s = (params["b2"] * scale).astype(jnp.float32)
    w2_p = jnp.pad(w2_s, ((0, 0), (0, 0), (0, Dpad - Dout)))
    b2_p = jnp.pad(b2_s, ((0, 0), (0, 0), (0, Dpad - Dout)))

    # matmul operands optionally in bf16 (f32 accumulation stays in-kernel).
    x_c = x.astype(param_dtype)
    w1_c = w1_flat.astype(param_dtype)
    w2_c = w2_p.astype(param_dtype)
    gates_f = gates.astype(jnp.float32)

    # batch tiling: independent rows -> "parallel" grid axis (v7x: 2 TensorCores).
    tb = 128 if (B % 128 == 0) else B
    grid = (B // tb,)

    y_pad = pl.pallas_call(
        _moe_kernel,
        out_shape=jax.ShapeDtypeStruct((B, Dpad), jnp.float32),
        grid=grid,
        in_specs=[
            pl.BlockSpec((tb, Din), lambda i: (i, 0)),        # x tile
            pl.BlockSpec((tb, E), lambda i: (i, 0)),          # gates tile
            pl.BlockSpec((Din, E * H), lambda i: (0, 0)),     # W1 flattened (all experts)
            pl.BlockSpec((1, E * H), lambda i: (0, 0)),       # b1 flattened
            pl.BlockSpec((E, H, Dpad), lambda i: (0, 0, 0)),  # W2 (scale folded, padded)
            pl.BlockSpec((E, 1, Dpad), lambda i: (0, 0, 0)),  # b2 (scale folded, padded)
        ],
        out_specs=pl.BlockSpec((tb, Dpad), lambda i: (i, 0)),
        compiler_params=pltpu.CompilerParams(
            dimension_semantics=("parallel",)),
    )(x_c, gates_f, w1_c, b1_flat, w2_c, b2_p)

    return y_pad[:, :Dout]


def moe_reference(x, params, k):
    """Pure-JAX reference of the PyTorch forward (dense form)."""
    logits = x @ params["w_gate"]
    top_vals, top_idx = jax.lax.top_k(logits, k)
    top_gates = jax.nn.softmax(top_vals, axis=1)
    gates = jnp.zeros_like(logits).at[
        jnp.arange(x.shape[0])[:, None], top_idx].set(top_gates)
    h = jnp.maximum(jnp.einsum("bd,edh->ebh", x, params["w1"]) + params["b1"], 0.0)
    out = (jnp.einsum("ebh,eho->ebo", h, params["w2"]) + params["b2"]) \
        * params["scale"][:, :, None]
    combined = jnp.einsum("be,ebo->bo", gates, jnp.exp(out))
    eps = np.finfo(float).eps
    combined = jnp.where(combined == 0.0, eps, combined)
    return jnp.log(combined)


if __name__ == "__main__":
    # small shapes consistent with the module's forward: x is [batch, input_size]
    B, Din, H, Dout, E, K = 8, 32, 32, 32, 8, 4

    key = jax.random.PRNGKey(0)
    k1, k2, k3, k4, kx = jax.random.split(key, 5)

    # w_gate init exactly as in __init__: column i = linspace(1, 0.001, E)[i]
    init_values = jnp.linspace(1.0, 0.001, E, dtype=jnp.float32)
    w_gate = jnp.tile(init_values[None, :], (Din, 1))

    params = {
        "w_gate": w_gate,
        "w1": 0.1 * jax.random.normal(k1, (E, Din, H), jnp.float32),
        "b1": 0.1 * jax.random.normal(k2, (E, 1, H), jnp.float32),
        "w2": 0.1 * jax.random.normal(k3, (E, H, Dout), jnp.float32),
        "b2": 0.1 * jax.random.normal(k4, (E, 1, Dout), jnp.float32),
        # deterministic per-expert scale_coeff (kwargs['scale_coeff'])
        "scale": jnp.linspace(1.0, 0.5, E, dtype=jnp.float32).reshape(E, 1),
    }

    x = jax.random.normal(kx, (B, Din), jnp.float32)

    # f32 path: strict correctness vs. pure-JAX reference.
    y = moe_forward(x, params, K)
    jax.block_until_ready(y)
    y_ref = moe_reference(x, params, K)
    np.testing.assert_allclose(np.asarray(y), np.asarray(y_ref),
                               rtol=1e-5, atol=1e-5)

    # bf16-operand path (for the weight-DMA-bound regime at production sizes):
    # just check it compiles, runs and produces finite values.
    y_bf16 = moe_forward(x, params, K, param_dtype=jnp.bfloat16)
    jax.block_until_ready(y_bf16)
    assert bool(jnp.all(jnp.isfinite(y_bf16)))

    # TODO(synk): cv_squared load-balancing loss (self.loss) is an auxiliary
    # training quantity not returned by forward(); intentionally not ported.
    print("KERNEL_OK")
</pallas_src>

<mosaic_0001>
module attributes {stable_mosaic.version = 11 : i64} {
  func.func @_moe_kernel(%arg0: i32, %arg1: memref<8x32xf32, #tpu.memory_space<vmem>>, %arg2: memref<8x8xf32, #tpu.memory_space<vmem>>, %arg3: memref<32x256xf32, #tpu.memory_space<vmem>>, %arg4: memref<1x256xf32, #tpu.memory_space<vmem>>, %arg5: memref<8x32x128xf32, #tpu.memory_space<vmem>>, %arg6: memref<8x1x128xf32, #tpu.memory_space<vmem>>, %arg7: memref<8x128xf32, #tpu.memory_space<vmem>>) attributes {dimension_semantics = [#tpu.dimension_semantics<parallel>], iteration_bounds = array<i64: 1>, scalar_prefetch = 0 : i64, scratch_operands = 0 : i64, tpu.core_type = #tpu.core_type<tc>, window_params = [{transform_indices = @transform_0, window_bounds = array<i64: 8, 32>}, {transform_indices = @transform_1, window_bounds = array<i64: 8, 8>}, {pipeline_mode = #tpu.pipeline_mode<synchronous>, transform_indices = @transform_2, window_bounds = array<i64: 32, 256>}, {pipeline_mode = #tpu.pipeline_mode<synchronous>, transform_indices = @transform_3, window_bounds = array<i64: 1, 256>}, {pipeline_mode = #tpu.pipeline_mode<synchronous>, transform_indices = @transform_4, window_bounds = array<i64: 8, 32, 128>}, {pipeline_mode = #tpu.pipeline_mode<synchronous>, transform_indices = @transform_5, window_bounds = array<i64: 8, 1, 128>}, {transform_indices = @transform_6, window_bounds = array<i64: 8, 128>}]} {
    %c0 = arith.constant 0 : index
    %c0_0 = arith.constant 0 : index
    %0 = vector.load %arg1[%c0, %c0_0] : memref<8x32xf32, #tpu.memory_space<vmem>>, vector<8x32xf32>
    %c0_1 = arith.constant 0 : index
    %c0_2 = arith.constant 0 : index
    %1 = vector.load %arg3[%c0_1, %c0_2] : memref<32x256xf32, #tpu.memory_space<vmem>>, vector<32x256xf32>
    %cst = arith.constant dense<0.000000e+00> : vector<8x256xf32>
    %2 = tpu.matmul %0, %1, %cst {dimension_numbers = #tpu.dot_dimension_numbers<[1], [0], [0], [1], [0, 0, 1, 1], [], []>} : vector<8x32xf32>, vector<32x256xf32>, vector<8x256xf32> -> vector<8x256xf32>
    %c0_3 = arith.constant 0 : index
    %c0_4 = arith.constant 0 : index
    %3 = vector.load %arg4[%c0_3, %c0_4] : memref<1x256xf32, #tpu.memory_space<vmem>>, vector<1x256xf32>
    %4 = vector.broadcast %3 : vector<1x256xf32> to vector<8x256xf32>
    %5 = arith.addf %2, %4 : vector<8x256xf32>
    %cst_5 = arith.constant 0.000000e+00 : f32
    %6 = vector.broadcast %cst_5 : f32 to vector<8x256xf32>
    %7 = arith.maximumf %5, %6 : vector<8x256xf32>
    %c0_6 = arith.constant 0 : index
    %c0_7 = arith.constant 0 : index
    %8 = vector.load %arg2[%c0_6, %c0_7] : memref<8x8xf32, #tpu.memory_space<vmem>>, vector<8x8xf32>
    %cst_8 = arith.constant 0.000000e+00 : f32
    %9 = vector.broadcast %cst_8 : f32 to vector<8x128xf32>
    %10 = vector.extract_strided_slice %7 {offsets = [0, 0], sizes = [8, 32], strides = [1, 1]} : vector<8x256xf32> to vector<8x32xf32>
    %c0_9 = arith.constant 0 : index
    %c0_10 = arith.constant 0 : index
    %c0_11 = arith.constant 0 : index
    %11 = vector.load %arg5[%c0_9, %c0_10, %c0_11] : memref<8x32x128xf32, #tpu.memory_space<vmem>>, vector<1x32x128xf32>
    %12 = vector.shape_cast %11 : vector<1x32x128xf32> to vector<32x128xf32>
    %cst_12 = arith.constant dense<0.000000e+00> : vector<8x128xf32>
    %13 = tpu.matmul %10, %12, %cst_12 {dimension_numbers = #tpu.dot_dimension_numbers<[1], [0], [0], [1], [0, 0, 1, 1], [], []>} : vector<8x32xf32>, vector<32x128xf32>, vector<8x128xf32> -> vector<8x128xf32>
    %c0_13 = arith.constant 0 : index
    %c0_14 = arith.constant 0 : index
    %c0_15 = arith.constant 0 : index
    %14 = vector.load %arg6[%c0_13, %c0_14, %c0_15] : memref<8x1x128xf32, #tpu.memory_space<vmem>>, vector<1x1x128xf32>
    %15 = vector.shape_cast %14 : vector<1x1x128xf32> to vector<1x128xf32>
    %16 = vector.broadcast %15 : vector<1x128xf32> to vector<8x128xf32>
    %17 = arith.addf %13, %16 : vector<8x128xf32>
    %18 = vector.extract_strided_slice %8 {offsets = [0, 0], sizes = [8, 1], strides = [1, 1]} : vector<8x8xf32> to vector<8x1xf32>
    %19 = math.exp %17 : vector<8x128xf32>
    %20 = vector.broadcast %18 : vector<8x1xf32> to vector<8x128xf32>
    %21 = arith.mulf %20, %19 : vector<8x128xf32>
    %22 = arith.addf %9, %21 : vector<8x128xf32>
    %23 = vector.extract_strided_slice %7 {offsets = [0, 32], sizes = [8, 32], strides = [1, 1]} : vector<8x256xf32> to vector<8x32xf32>
    %c1 = arith.constant 1 : index
    %c0_16 = arith.constant 0 : index
    %c0_17 = arith.constant 0 : index
    %24 = vector.load %arg5[%c1, %c0_16, %c0_17] : memref<8x32x128xf32, #tpu.memory_space<vmem>>, vector<1x32x128xf32>
    %25 = vector.shape_cast %24 : vector<1x32x128xf32> to vector<32x128xf32>
    %cst_18 = arith.constant dense<0.000000e+00> : vector<8x128xf32>
    %26 = tpu.matmul %23, %25, %cst_18 {dimension_numbers = #tpu.dot_dimension_numbers<[1], [0], [0], [1], [0, 0, 1, 1], [], []>} : vector<8x32xf32>, vector<32x128xf32>, vector<8x128xf32> -> vector<8x128xf32>
    %c1_19 = arith.constant 1 : index
    %c0_20 = arith.constant 0 : index
    %c0_21 = arith.constant 0 : index
    %27 = vector.load %arg6[%c1_19, %c0_20, %c0_21] : memref<8x1x128xf32, #tpu.memory_space<vmem>>, vector<1x1x128xf32>
    %28 = vector.shape_cast %27 : vector<1x1x128xf32> to vector<1x128xf32>
    %29 = vector.broadcast %28 : vector<1x128xf32> to vector<8x128xf32>
    %30 = arith.addf %26, %29 : vector<8x128xf32>
    %31 = vector.extract_strided_slice %8 {offsets = [0, 1], sizes = [8, 1], strides = [1, 1]} : vector<8x8xf32> to vector<8x1xf32>
    %32 = math.exp %30 : vector<8x128xf32>
    %33 = vector.broadcast %31 : vector<8x1xf32> to vector<8x128xf32>
    %34 = arith.mulf %33, %32 : vector<8x128xf32>
    %35 = arith.addf %22, %34 : vector<8x128xf32>
    %36 = vector.extract_strided_slice %7 {offsets = [0, 64], sizes = [8, 32], strides = [1, 1]} : vector<8x256xf32> to vector<8x32xf32>
    %c2 = arith.constant 2 : index
    %c0_22 = arith.constant 0 : index
    %c0_23 = arith.constant 0 : index
    %37 = vector.load %arg5[%c2, %c0_22, %c0_23] : memref<8x32x128xf32, #tpu.memory_space<vmem>>, vector<1x32x128xf32>
    %38 = vector.shape_cast %37 : vector<1x32x128xf32> to vector<32x128xf32>
    %cst_24 = arith.constant dense<0.000000e+00> : vector<8x128xf32>
    %39 = tpu.matmul %36, %38, %cst_24 {dimension_numbers = #tpu.dot_dimension_numbers<[1], [0], [0], [1], [0, 0, 1, 1], [], []>} : vector<8x32xf32>, vector<32x128xf32>, vector<8x128xf32> -> vector<8x128xf32>
    %c2_25 = arith.constant 2 : index
    %c0_26 = arith.constant 0 : index
    %c0_27 = arith.constant 0 : index
    %40 = vector.load %arg6[%c2_25, %c0_26, %c0_27] : memref<8x1x128xf32, #tpu.memory_space<vmem>>, vector<1x1x128xf32>
    %41 = vector.shape_cast %40 : vector<1x1x128xf32> to vector<1x128xf32>
    %42 = vector.broadcast %41 : vector<1x128xf32> to vector<8x128xf32>
    %43 = arith.addf %39, %42 : vector<8x128xf32>
    %44 = vector.extract_strided_slice %8 {offsets = [0, 2], sizes = [8, 1], strides = [1, 1]} : vector<8x8xf32> to vector<8x1xf32>
    %45 = math.exp %43 : vector<8x128xf32>
    %46 = vector.broadcast %44 : vector<8x1xf32> to vector<8x128xf32>
    %47 = arith.mulf %46, %45 : vector<8x128xf32>
    %48 = arith.addf %35, %47 : vector<8x128xf32>
    %49 = vector.extract_strided_slice %7 {offsets = [0, 96], sizes = [8, 32], strides = [1, 1]} : vector<8x256xf32> to vector<8x32xf32>
    %c3 = arith.constant 3 : index
    %c0_28 = arith.constant 0 : index
    %c0_29 = arith.constant 0 : index
    %50 = vector.load %arg5[%c3, %c0_28, %c0_29] : memref<8x32x128xf32, #tpu.memory_space<vmem>>, vector<1x32x128xf32>
    %51 = vector.shape_cast %50 : vector<1x32x128xf32> to vector<32x128xf32>
    %cst_30 = arith.constant dense<0.000000e+00> : vector<8x128xf32>
    %52 = tpu.matmul %49, %51, %cst_30 {dimension_numbers = #tpu.dot_dimension_numbers<[1], [0], [0], [1], [0, 0, 1, 1], [], []>} : vector<8x32xf32>, vector<32x128xf32>, vector<8x128xf32> -> vector<8x128xf32>
    %c3_31 = arith.constant 3 : index
    %c0_32 = arith.constant 0 : index
    %c0_33 = arith.constant 0 : index
    %53 = vector.load %arg6[%c3_31, %c0_32, %c0_33] : memref<8x1x128xf32, #tpu.memory_space<vmem>>, vector<1x1x128xf32>
    %54 = vector.shape_cast %53 : vector<1x1x128xf32> to vector<1x128xf32>
    %55 = vector.broadcast %54 : vector<1x128xf32> to vector<8x128xf32>
    %56 = arith.addf %52, %55 : vector<8x128xf32>
    %57 = vector.extract_strided_slice %8 {offsets = [0, 3], sizes = [8, 1], strides = [1, 1]} : vector<8x8xf32> to vector<8x1xf32>
    %58 = math.exp %56 : vector<8x128xf32>
    %59 = vector.broadcast %57 : vector<8x1xf32> to vector<8x128xf32>
    %60 = arith.mulf %59, %58 : vector<8x128xf32>
    %61 = arith.addf %48, %60 : vector<8x128xf32>
    %62 = vector.extract_strided_slice %7 {offsets = [0, 128], sizes = [8, 32], strides = [1, 1]} : vector<8x256xf32> to vector<8x32xf32>
    %c4 = arith.constant 4 : index
    %c0_34 = arith.constant 0 : index
    %c0_35 = arith.constant 0 : index
    %63 = vector.load %arg5[%c4, %c0_34, %c0_35] : memref<8x32x128xf32, #tpu.memory_space<vmem>>, vector<1x32x128xf32>
    %64 = vector.shape_cast %63 : vector<1x32x128xf32> to vector<32x128xf32>
    %cst_36 = arith.constant dense<0.000000e+00> : vector<8x128xf32>
    %65 = tpu.matmul %62, %64, %cst_36 {dimension_numbers = #tpu.dot_dimension_numbers<[1], [0], [0], [1], [0, 0, 1, 1], [], []>} : vector<8x32xf32>, vector<32x128xf32>, vector<8x128xf32> -> vector<8x128xf32>
    %c4_37 = arith.constant 4 : index
    %c0_38 = arith.constant 0 : index
    %c0_39 = arith.constant 0 : index
    %66 = vector.load %arg6[%c4_37, %c0_38, %c0_39] : memref<8x1x128xf32, #tpu.memory_space<vmem>>, vector<1x1x128xf32>
    %67 = vector.shape_cast %66 : vector<1x1x128xf32> to vector<1x128xf32>
    %68 = vector.broadcast %67 : vector<1x128xf32> to vector<8x128xf32>
    %69 = arith.addf %65, %68 : vector<8x128xf32>
    %70 = vector.extract_strided_slice %8 {offsets = [0, 4], sizes = [8, 1], strides = [1, 1]} : vector<8x8xf32> to vector<8x1xf32>
    %71 = math.exp %69 : vector<8x128xf32>
    %72 = vector.broadcast %70 : vector<8x1xf32> to vector<8x128xf32>
    %73 = arith.mulf %72, %71 : vector<8x128xf32>
    %74 = arith.addf %61, %73 : vector<8x128xf32>
    %75 = vector.extract_strided_slice %7 {offsets = [0, 160], sizes = [8, 32], strides = [1, 1]} : vector<8x256xf32> to vector<8x32xf32>
    %c5 = arith.constant 5 : index
    %c0_40 = arith.constant 0 : index
    %c0_41 = arith.constant 0 : index
    %76 = vector.load %arg5[%c5, %c0_40, %c0_41] : memref<8x32x128xf32, #tpu.memory_space<vmem>>, vector<1x32x128xf32>
    %77 = vector.shape_cast %76 : vector<1x32x128xf32> to vector<32x128xf32>
    %cst_42 = arith.constant dense<0.000000e+00> : vector<8x128xf32>
    %78 = tpu.matmul %75, %77, %cst_42 {dimension_numbers = #tpu.dot_dimension_numbers<[1], [0], [0], [1], [0, 0, 1, 1], [], []>} : vector<8x32xf32>, vector<32x128xf32>, vector<8x128xf32> -> vector<8x128xf32>
    %c5_43 = arith.constant 5 : index
    %c0_44 = arith.constant 0 : index
    %c0_45 = arith.constant 0 : index
    %79 = vector.load %arg6[%c5_43, %c0_44, %c0_45] : memref<8x1x128xf32, #tpu.memory_space<vmem>>, vector<1x1x128xf32>
    %80 = vector.shape_cast %79 : vector<1x1x128xf32> to vector<1x128xf32>
    %81 = vector.broadcast %80 : vector<1x128xf32> to vector<8x128xf32>
    %82 = arith.addf %78, %81 : vector<8x128xf32>
    %83 = vector.extract_strided_slice %8 {offsets = [0, 5], sizes = [8, 1], strides = [1, 1]} : vector<8x8xf32> to vector<8x1xf32>
    %84 = math.exp %82 : vector<8x128xf32>
    %85 = vector.broadcast %83 : vector<8x1xf32> to vector<8x128xf32>
    %86 = arith.mulf %85, %84 : vector<8x128xf32>
    %87 = arith.addf %74, %86 : vector<8x128xf32>
    %88 = vector.extract_strided_slice %7 {offsets = [0, 192], sizes = [8, 32], strides = [1, 1]} : vector<8x256xf32> to vector<8x32xf32>
    %c6 = arith.constant 6 : index
    %c0_46 = arith.constant 0 : index
    %c0_47 = arith.constant 0 : index
    %89 = vector.load %arg5[%c6, %c0_46, %c0_47] : memref<8x32x128xf32, #tpu.memory_space<vmem>>, vector<1x32x128xf32>
    %90 = vector.shape_cast %89 : vector<1x32x128xf32> to vector<32x128xf32>
    %cst_48 = arith.constant dense<0.000000e+00> : vector<8x128xf32>
    %91 = tpu.matmul %88, %90, %cst_48 {dimension_numbers = #tpu.dot_dimension_numbers<[1], [0], [0], [1], [0, 0, 1, 1], [], []>} : vector<8x32xf32>, vector<32x128xf32>, vector<8x128xf32> -> vector<8x128xf32>
    %c6_49 = arith.constant 6 : index
    %c0_50 = arith.constant 0 : index
    %c0_51 = arith.constant 0 : index
    %92 = vector.load %arg6[%c6_49, %c0_50, %c0_51] : memref<8x1x128xf32, #tpu.memory_space<vmem>>, vector<1x1x128xf32>
    %93 = vector.shape_cast %92 : vector<1x1x128xf32> to vector<1x128xf32>
    %94 = vector.broadcast %93 : vector<1x128xf32> to vector<8x128xf32>
    %95 = arith.addf %91, %94 : vector<8x128xf32>
    %96 = vector.extract_strided_slice %8 {offsets = [0, 6], sizes = [8, 1], strides = [1, 1]} : vector<8x8xf32> to vector<8x1xf32>
    %97 = math.exp %95 : vector<8x128xf32>
    %98 = vector.broadcast %96 : vector<8x1xf32> to vector<8x128xf32>
    %99 = arith.mulf %98, %97 : vector<8x128xf32>
    %100 = arith.addf %87, %99 : vector<8x128xf32>
    %101 = vector.extract_strided_slice %7 {offsets = [0, 224], sizes = [8, 32], strides = [1, 1]} : vector<8x256xf32> to vector<8x32xf32>
    %c7 = arith.constant 7 : index
    %c0_52 = arith.constant 0 : index
    %c0_53 = arith.constant 0 : index
    %102 = vector.load %arg5[%c7, %c0_52, %c0_53] : memref<8x32x128xf32, #tpu.memory_space<vmem>>, vector<1x32x128xf32>
    %103 = vector.shape_cast %102 : vector<1x32x128xf32> to vector<32x128xf32>
    %cst_54 = arith.constant dense<0.000000e+00> : vector<8x128xf32>
    %104 = tpu.matmul %101, %103, %cst_54 {dimension_numbers = #tpu.dot_dimension_numbers<[1], [0], [0], [1], [0, 0, 1, 1], [], []>} : vector<8x32xf32>, vector<32x128xf32>, vector<8x128xf32> -> vector<8x128xf32>
    %c7_55 = arith.constant 7 : index
    %c0_56 = arith.constant 0 : index
    %c0_57 = arith.constant 0 : index
    %105 = vector.load %arg6[%c7_55, %c0_56, %c0_57] : memref<8x1x128xf32, #tpu.memory_space<vmem>>, vector<1x1x128xf32>
    %106 = vector.shape_cast %105 : vector<1x1x128xf32> to vector<1x128xf32>
    %107 = vector.broadcast %106 : vector<1x128xf32> to vector<8x128xf32>
    %108 = arith.addf %104, %107 : vector<8x128xf32>
    %109 = vector.extract_strided_slice %8 {offsets = [0, 7], sizes = [8, 1], strides = [1, 1]} : vector<8x8xf32> to vector<8x1xf32>
    %110 = math.exp %108 : vector<8x128xf32>
    %111 = vector.broadcast %109 : vector<8x1xf32> to vector<8x128xf32>
    %112 = arith.mulf %111, %110 : vector<8x128xf32>
    %113 = arith.addf %100, %112 : vector<8x128xf32>
    %cst_58 = arith.constant 0.000000e+00 : f32
    %114 = vector.broadcast %cst_58 : f32 to vector<8x128xf32>
    %115 = arith.cmpf oeq, %113, %114 : vector<8x128xf32>
    %cst_59 = arith.constant 2.22044605E-16 : f32
    %116 = vector.broadcast %cst_59 : f32 to vector<8x128xf32>
    %117 = arith.select %115, %116, %113 : vector<8x128xi1>, vector<8x128xf32>
    %118 = math.log %117 : vector<8x128xf32>
    %c0_60 = arith.constant 0 : index
    %c0_61 = arith.constant 0 : index
    %119 = vector.load %arg7[%c0_60, %c0_61] : memref<8x128xf32, #tpu.memory_space<vmem>>, vector<8x128xf32>
    tpu.vector_store %arg7[%c0_60, %c0_61], %118 {strides = array<i32>} : memref<8x128xf32, #tpu.memory_space<vmem>>, vector<8x128xf32>,
    return
  }
  func.func @transform_0(%arg0: i32) -> (i32, i32) {
    %c0_i32 = arith.constant 0 : i32
    %c0_i32_0 = arith.constant 0 : i32
    return %arg0, %c0_i32 : i32, i32
  }
  func.func @transform_1(%arg0: i32) -> (i32, i32) {
    %c0_i32 = arith.constant 0 : i32
    %c0_i32_0 = arith.constant 0 : i32
    return %arg0, %c0_i32 : i32, i32
  }
  func.func @transform_2(%arg0: i32) -> (i32, i32) {
    %c0_i32 = arith.constant 0 : i32
    %c0_i32_0 = arith.constant 0 : i32
    %c0_i32_1 = arith.constant 0 : i32
    return %c0_i32, %c0_i32_0 : i32, i32
  }
  func.func @transform_3(%arg0: i32) -> (i32, i32) {
    %c0_i32 = arith.constant 0 : i32
    %c0_i32_0 = arith.constant 0 : i32
    %c0_i32_1 = arith.constant 0 : i32
    return %c0_i32, %c0_i32_0 : i32, i32
  }
  func.func @transform_4(%arg0: i32) -> (i32, i32, i32) {
    %c0_i32 = arith.constant 0 : i32
    %c0_i32_0 = arith.constant 0 : i32
    %c0_i32_1 = arith.constant 0 : i32
    %c0_i32_2 = arith.constant 0 : i32
    return %c0_i32, %c0_i32_0, %c0_i32_1 : i32, i32, i32
  }
  func.func @transform_5(%arg0: i32) -> (i32, i32, i32) {
    %c0_i32 = arith.constant 0 : i32
    %c0_i32_0 = arith.constant 0 : i32
    %c0_i32_1 = arith.constant 0 : i32
    %c0_i32_2 = arith.constant 0 : i32
    return %c0_i32, %c0_i32_0, %c0_i32_1 : i32, i32, i32
  }
  func.func @transform_6(%arg0: i32) -> (i32, i32) {
    %c0_i32 = arith.constant 0 : i32
    %c0_i32_0 = arith.constant 0 : i32
    return %arg0, %c0_i32 : i32, i32
  }
}

</mosaic_0001>

<bundles_post_ra>
// kernel: tpu_custom_call.1
= control target key start
LH: loop header
LB: loop body
LE: loop exit
PB: predicated region body
PF: predicated region fallthrough
CT: control target
= control target key end

     0   :  { %11 = vsyncpa [#allocation3], 0  ;;  %s1522_s0 = inlined_call_operand.hbm [shape: f32[8,32], index: 0, kind: input, shape index: {}]   ;;  %s1523_s1 = inlined_call_operand.hbm [shape: f32[8,8], index: 1, kind: input, shape index: {}]   ;;  %s1524_s2 = inlined_call_operand.hbm [shape: f32[32,256], index: 2, kind: input, shape index: {}]   ;;  %s1525_s3 = inlined_call_operand.vmem [shape: f32[1,256], index: 3, kind: input, shape index: {}]   ;;  %s1526_s4 = inlined_call_operand.hbm [shape: f32[8,32,128], index: 4, kind: input, shape index: {}]   ;;  %s1527_s5 = inlined_call_operand.vmem [shape: f32[8,1,128], index: 5, kind: input, shape index: {}]   ;;  %s1528_s6 = inlined_call_operand.hbm [shape: f32[8,128], index: 6, kind: output, shape index: {}]  }
   0x1   :  { %12 = vsyncpa [#allocation6], 0 }
   0x2   :  { %13 = vsyncpa [#allocation9], 0 }
   0x3   :  { %14 = vsyncpa [#allocation4], 0  ;;  %s1329_s21 = smov [#allocation5]   ;;  %s1330_s23 = smov [#allocation2]  }
   0x4   :  { %s31_s22 = sshll.u32 %s1329_s21, 4  ;;  %s21_s24 = sshll.u32 %s1330_s23, 4  ;;  %s32_s22 = int_to_ptr.vmem [resolvable:$true] %s31_s22  ;;  %s22_s24 = int_to_ptr.vmem [resolvable:$true] %s21_s24 }
   0x5   :  { %s1211_s27 = scalar_lea.hbm %s1523_s1, 128 }
   0x6   :  { %p1212_p0 = scmp.ne.s32.totalorder %s1523_s1, %s1211_s27  ;;  %p1215_p1 = scmp.lt.u32.totalorder %s1211_s27, %s1523_s1 }
   0x8   :  { %p1217_p2 = pnand %p1215_p1, %p1212_p0 }
   0xa   :  { %1220 = shalt.err (!%p1217_p2)
}
   0xb   :  { %s1221_s8 = scalar_lea.vmem %s32_s22, 128  ;;  %p1226_p4 = scmp.lt.s32.totalorder %s32_s22, %s32_s22 }
   0xc   :  { %p1222_p3 = scmp.ne.s32.totalorder %s32_s22, %s1221_s8  ;;  %p1227_p5 = scmp.lt.s32.totalorder %s1221_s8, %s1221_s8 }
   0xe   :  { %p1228_p6 = por %p1227_p5, %p1226_p4 }
  0x10   :  { %p1229_p7 = pnand %p1228_p6, %p1222_p3 }
  0x12   :  { %1232 = shalt.err (!%p1229_p7)
}
  0x13   :  { %34 = dma.hbm_to_vmem [thread:$0]  %s1523_s1, 128, %s32_s22, [#allocation6]  }
  0x14   :  { %s1233_s13 = scalar_lea.hbm %s1522_s0, 128 }
  0x15   :  { %p1234_p8 = scmp.ne.s32.totalorder %s1522_s0, %s1233_s13  ;;  %p1237_p9 = scmp.lt.u32.totalorder %s1233_s13, %s1522_s0 }
  0x17   :  { %p1239_p10 = pnand %p1237_p9, %p1234_p8 }
  0x19   :  { %1242 = shalt.err (!%p1239_p10)
}
  0x1a   :  { %s1243_s18 = scalar_lea.vmem %s22_s24, 128  ;;  %p1248_p12 = scmp.lt.s32.totalorder %s22_s24, %s22_s24 }
  0x1b   :  { %p1244_p11 = scmp.ne.s32.totalorder %s22_s24, %s1243_s18  ;;  %p1249_p13 = scmp.lt.s32.totalorder %s1243_s18, %s1243_s18 }
  0x1d   :  { %p1250_p0 = por %p1249_p13, %p1248_p12 }
  0x1f   :  { %p1251_p1 = pnand %p1250_p0, %p1244_p11 }
  0x21   :  { %1254 = shalt.err (!%p1251_p1)
}
  0x22   :  { %24 = dma.hbm_to_vmem [thread:$0]  %s1522_s0, 128, %s22_s24, [#allocation3]  }
  0x23   :  { %s1331_s20 = smov [#allocation7]   ;;  %s1255_s25 = scalar_lea.hbm %s1524_s2, 1024 }
  0x24   :  { %s40_s21 = sshll.u32 %s1331_s20, 4  ;;  %p1256_p2 = scmp.ne.s32.totalorder %s1524_s2, %s1255_s25  ;;  %s41_s21 = int_to_ptr.vmem [resolvable:$true] %s40_s21 }
  0x25   :  { %p1259_p3 = scmp.lt.u32.totalorder %s1255_s25, %s1524_s2 }
  0x27   :  { %p1261_p4 = pnand %p1259_p3, %p1256_p2 }
  0x29   :  { %1264 = shalt.err (!%p1261_p4)
}
  0x2a   :  { %s1265_s30 = scalar_lea.vmem %s41_s21, 1024  ;;  %p1270_p6 = scmp.lt.s32.totalorder %s41_s21, %s41_s21 }
  0x2b   :  { %p1266_p5 = scmp.ne.s32.totalorder %s41_s21, %s1265_s30  ;;  %p1271_p7 = scmp.lt.s32.totalorder %s1265_s30, %s1265_s30 }
  0x2d   :  { %p1272_p8 = por %p1271_p7, %p1270_p6 }
  0x2f   :  { %p1273_p9 = pnand %p1272_p8, %p1266_p5 }
  0x31   :  { %1276 = shalt.err (!%p1273_p9)
}
  0x32   :  { %s1332_s0 = smov 256   ;;  %s1333_s24 = smov 16  }
  0x33   :  { %46 = dma.hbm_to_vmem [thread:$0]  %s1524_s2, 1024, %s41_s21, [#allocation6], %s1332_s0, %s1332_s0, %s1333_s24  }
  0x34   :  { %s1334_s9 = smov [#allocation8]   ;;  %s1277_s13 = scalar_lea.hbm %s1526_s4, 4096 }
  0x35   :  { %s54_s10 = sshll.u32 %s1334_s9, 4  ;;  %p1278_p10 = scmp.ne.s32.totalorder %s1526_s4, %s1277_s13  ;;  %s55_s10 = int_to_ptr.vmem [resolvable:$true] %s54_s10 }
  0x36   :  { %p1281_p11 = scmp.lt.u32.totalorder %s1277_s13, %s1526_s4 }
  0x38   :  { %p1283_p12 = pnand %p1281_p11, %p1278_p10 }
  0x3a   :  { %1286 = shalt.err (!%p1283_p12)
}
  0x3b   :  { %s1287_s18 = scalar_lea.vmem %s55_s10, 4096  ;;  %p1292_p0 = scmp.lt.s32.totalorder %s55_s10, %s55_s10 }
  0x3c   :  { %p1288_p13 = scmp.ne.s32.totalorder %s55_s10, %s1287_s18  ;;  %p1293_p1 = scmp.lt.s32.totalorder %s1287_s18, %s1287_s18 }
  0x3e   :  { %p1294_p2 = por %p1293_p1, %p1292_p0 }
  0x40   :  { %p1295_p3 = pnand %p1294_p2, %p1288_p13 }
  0x42   :  { %1298 = shalt.err (!%p1295_p3)
}
  0x43   :  { %s1335_s2 = smov 128   ;;  %s1336_s1 = smov 8  }
  0x44   :  { %60 = dma.hbm_to_vmem [thread:$0]  %s1526_s4, 4096, %s55_s10, [#allocation9], %s1335_s2, %s1335_s2, %s1336_s1  }
  0x45   :  { %1321 = dma.done.wait [#allocation3], 128  }
  0x46   :  { %1322 = vsyncadd [#allocation3], 4294967168 }
  0x47   :  { %1323 = dma.done.wait [#allocation6], 1152  }
  0x48   :  { %1324 = vsyncadd [#allocation6], 4294966144 }
  0x49   :  { %1325 = dma.done.wait [#allocation9], 4096  }
  0x4a   :  { %1326 = vsyncadd [#allocation9], 4294963200  ;;  %v1337_v0 = vmov 0.0   ;;  %v1338_v1 = vmov 0.0|0.0   ;;  %v77_v2 = vld [vmem:[#allocation7 + $0x8] sm:$0xff]  ;;  %v79_v3 = vld [vmem:[#allocation7 + $0x18] sm:$0xff]  ;;  %v86_v28 = vlaneseq }
  0x4b   :  { %164 = vmatprep.mubr.f32.mxu0 %v1337_v0  ;;  %1113 = vmatprep.subr.bf16.mxu1 %v1338_v1  ;;  %v76_v4 = vld [vmem:[#allocation7] sm:$0xff]  ;;  %v1105_v5 = vpack.c.bf16 %v79_v3, %v77_v2  ;;  %v78_v6 = vld [vmem:[#allocation7 + $0x10] sm:$0xff]  ;;  %v81_v7 = vld [vmem:[#allocation7 + $0x28] sm:$0xff]  ;;  %vm96_vm0 = vcmask 261120   ;;  %vm1339_vm1 = vmmov 0   ;;  %v1340_v21 = vmov 0  }
  0x4c   :  { %v83_v8 = vld [vmem:[#allocation7 + $0x38] sm:$0xff]  ;;  %v1107_v9 = vpack.c.bf16 %v78_v6, %v76_v4  ;;  %v80_v11 = vld [vmem:[#allocation7 + $0x20] sm:$0xff]  ;;  %v82_v12 = vld [vmem:[#allocation7 + $0x30] sm:$0xff]  ;;  %1025 = vmatprep.mubr.msk.f32.mxu1 %vm1339_vm1, %v1337_v0  ;;  %1184 = vset.pattern.permute.xlu0 %v1340_v21  ;;  %v87_v29 = vshrl.u32 %v86_v28, 7  ;;  %s1341_s22 = smov 32   ;;  %s1342_s23 = smov 96  }
  0x4d   :  { %v1109_v10 = vpack.c.bf16 %v83_v8, %v81_v7  ;;  %1106 = vmatprep.subr.bf16.mxu0 %v1105_v5  ;;  %v174_v13 = vld [vmem:[#allocation8] sm:$0xff]  ;;  %v175_v14 = vld [vmem:[#allocation8 + $0x8] sm:$0xff]  ;;  %v1111_v15 = vpack.c.bf16 %v82_v12, %v80_v11  ;;  %v75_v17 = vld [vmem:[#allocation2] sm:$0xff]  ;;  %v1344_v48 = vmov 1   ;;  %v1345_v49 = vmov 2  }
  0x4e   :  { %1108 = vmatpush1.bf16.msra.mxu0 %v1107_v9  ;;  %v1114_v16 = vpack.c.bf16 %v175_v14, %v174_v13  ;;  %v176_v18 = vld [vmem:[#allocation8 + $0x10] sm:$0xff]  ;;  %v177_v19 = vld [vmem:[#allocation8 + $0x18] sm:$0xff]  ;;  %v268_v22 = vld [vmem:[#allocation8 + $0x20] sm:$0xff]  ;;  %v88_v30 = vsub.s32 0, %v87_v29  ;;  %v92_v32 = vsub.s32 1, %v87_v29  ;;  %1185 = vset.pattern.permute.xlu1 %v1344_v48  ;;  %v1346_v50 = vmov 3  }
  0x4f   :  { %1110 = vmatprep.subr.bf16.mxu0 %v1109_v10  ;;  %v1117_v20 = vpack.c.bf16 %v177_v19, %v176_v18  ;;  %v269_v23 = vld [vmem:[#allocation8 + $0x28] sm:$0xff]  ;;  %v270_v24 = vld [vmem:[#allocation8 + $0x30] sm:$0xff]  ;;  %v271_v26 = vld [vmem:[#allocation8 + $0x38] sm:$0xff]  ;;  %v1347_v51 = vmov 4   ;;  %v1348_v52 = vmov 5   ;;  %v1349_v53 = vmov 6  }
  0x50   :  { %1115 = vmatpush3.bf16.msra.mxu1 %v1114_v16  ;;  %v1120_v25 = vpack.c.bf16 %v269_v23, %v268_v22  ;;  %v1123_v27 = vpack.c.bf16 %v271_v26, %v270_v24  ;;  %v84_v31 = vld [vmem:[%s1525_s3] sm:$0x3]  ;;  %v363_v36 = vld [vmem:[#allocation8 + $0x40] sm:$0xff]  ;;  %v364_v37 = vld [vmem:[#allocation8 + $0x48] sm:$0xff]  ;;  %s1343_s3 = smov 64   ;;  %v1350_v54 = vmov 7  }
  0x51   :  { %1116 = vmatprep.subr.bf16.mxu1 %v1338_v1  ;;  %v89_v33 = vrot.slane %v84_v31, %v88_v30  ;;  %v93_v34 = vrot.slane %v84_v31, %v92_v32  ;;  %v1126_v42 = vpack.c.bf16 %v364_v37, %v363_v36  ;;  %v365_v43 = vld [vmem:[#allocation8 + $0x50] sm:$0xff]  ;;  %v366_v44 = vld [vmem:[#allocation8 + $0x58] sm:$0xff]  ;;  %v458_v55 = vld [vmem:[#allocation8 + $0x60] sm:$0xff] }
  0x52   :  { %1112 = vmatpush1.bf16.msra.mxu0 %v1111_v15  ;;  %v1129_v46 = vpack.c.bf16 %v366_v44, %v365_v43  ;;  %v173_v47 = vld [vmem:[#allocation5] sm:$0xff]  ;;  %v459_v56 = vld [vmem:[#allocation8 + $0x68] sm:$0xff]  ;;  %v460_v58 = vld [vmem:[#allocation8 + $0x70] sm:$0xff] }
  0x53   :  { %1119 = vmatprep.subr.bf16.mxu0 %v1338_v1  ;;  %v1132_v57 = vpack.c.bf16 %v459_v56, %v458_v55  ;;  %v461_v59 = vld [vmem:[#allocation8 + $0x78] sm:$0xff]  ;;  %v553_v60 = vld [vmem:[#allocation8 + $0x80] sm:$0xff]  ;;  %v554_v61 = vld [vmem:[#allocation8 + $0x88] sm:$0xff] }
  0x54   :  { %1118 = vmatpush3.bf16.msra.mxu1 %v1117_v20  ;;  %v1135_v63 = vpack.c.bf16 %v461_v59, %v460_v58  ;;  %v1138_v2 = vpack.c.bf16 %v554_v61, %v553_v60  ;;  %v555_v3 = vld [vmem:[#allocation8 + $0x90] sm:$0xff]  ;;  %v556_v4 = vld [vmem:[#allocation8 + $0x98] sm:$0xff]  ;;  %v647_v5 = vld [vmem:[#allocation8 + $0xa0] sm:$0xff] }
  0x55   :  { %953 = vmatmul.mubr.msk.f32.vlgmr.msra.gmra.mrb[0].mxu0 %vm96_vm0, %v75_v17  ;;  %1125 = vmatprep.subr.bf16.mxu1 %v1338_v1  ;;  %v648_v6 = vld [vmem:[#allocation8 + $0xa8] sm:$0xff]  ;;  %v1141_v8 = vpack.c.bf16 %v556_v4, %v555_v3  ;;  %v649_v10 = vld [vmem:[#allocation8 + $0xb0] sm:$0xff]  ;;  %v650_v11 = vld [vmem:[#allocation8 + $0xb8] sm:$0xff] }
  0x56   :  { %1036 = vmatprep.mubr.msk.f32.mxu0 %vm1339_vm1, %v1337_v0  ;;  %1121 = vmatpush3.bf16.msra.mxu0 %v1120_v25  ;;  %v1144_v9 = vpack.c.bf16 %v648_v6, %v647_v5  ;;  %v742_v12 = vld [vmem:[#allocation8 + $0xc0] sm:$0xff]  ;;  %v743_v13 = vld [vmem:[#allocation8 + $0xc8] sm:$0xff]  ;;  %v1147_v15 = vpack.c.bf16 %v650_v11, %v649_v10  ;;  %v744_v17 = vld [vmem:[#allocation8 + $0xd0] sm:$0xff] }
  0x57   :  { %1122 = vmatprep.subr.bf16.mxu0 %v1338_v1  ;;  %v1150_v16 = vpack.c.bf16 %v743_v13, %v742_v12  ;;  %v745_v18 = vld [vmem:[#allocation8 + $0xd8] sm:$0xff]  ;;  %v837_v19 = vld [vmem:[#allocation8 + $0xe0] sm:$0xff]  ;;  %v838_v20 = vld [vmem:[#allocation8 + $0xe8] sm:$0xff] }
  0x58   :  { %v1153_v21 = vpack.c.bf16 %v745_v18, %v744_v17  ;;  %v1156_v22 = vpack.c.bf16 %v838_v20, %v837_v19  ;;  %v839_v23 = vld [vmem:[#allocation8 + $0xf0] sm:$0xff]  ;;  %v840_v24 = vld [vmem:[#allocation8 + $0xf8] sm:$0xff] }
  0x59   :  { %v1159_v26 = vpack.c.bf16 %v840_v24, %v839_v23  ;;  %v954_v31 = vld [vmem:[%s1527_s5] ss:$0 sm:$0xff]  ;;  %v960_v36 = vld [vmem:[%s1527_s5 + $0x2] ss:$0 sm:$0xff]  ;;  %v975_v11 = vld [vmem:[%s1527_s5 + $0x7] ss:$0 sm:$0xff] }
  0x5a   :  { %1124 = vmatpush3.bf16.msra.mxu0 %v1123_v27 }
  0x5b   :  { %1131 = vmatprep.subr.bf16.mxu0 %v1338_v1 }
 0x128   :  { %v166_v35 = vpop.f32.mrb[0].mxu0 }
 0x129   :  { %v167_v38 = vadd.f32 %v166_v35, %v89_v33  ;;  %v168_v39 = vpop.f32.mrb[1].mxu0 }
 0x12a   :  { %v169_v41 = vadd.f32 %v168_v39, %v93_v34 }
 0x12b   :  { %v171_v40 = vmax.f32 %v167_v38, 0.0 }
 0x12c   :  { %v1451_v45 = vmax.f32 %v169_v41, 0.0  ;;  %v963_v41 = vld [vmem:[%s1527_s5 + $0x3] ss:$0 sm:$0xff] }
 0x12d   :  { %470 = vrot.lane.b32.xlu1 %v171_v40, %s1341_s22  ;;  %280 = vrot.lane.b32.xlu0 %v171_v40, %s1342_s23 }
 0x12e   :  { %1026 = vmatmul.mubr.msk.f32.vlgmr.msra.gmra.mrb[0].mxu1 %vm96_vm0, %v171_v40 }
 0x12f   :  { %1127 = vmatpush3.bf16.msra.mxu1 %v1126_v42  ;;  %1047 = vmatprep.mubr.msk.f32.mxu1 %vm1339_vm1, %v1337_v0 }
 0x130   :  { %1128 = vmatprep.subr.bf16.mxu1 %v1338_v1 }
 0x131   :  { %659 = vrot.lane.b32.xlu1 %v1451_v45, %s1342_s23  ;;  %375 = vrot.lane.b32.xlu0 %v171_v40, %s1343_s3 }
 0x133   :  { %1130 = vmatpush3.bf16.msra.mxu1 %v1129_v46  ;;  %v966_v46 = vld [vmem:[%s1527_s5 + $0x4] ss:$0 sm:$0xff] }
 0x134   :  { %1137 = vmatprep.subr.bf16.mxu1 %v1338_v1 }
 0x135   :  { %849 = vrot.lane.b32.xlu1 %v1451_v45, %s1341_s22  ;;  %754 = vrot.lane.b32.xlu0 %v1451_v45, %s1343_s3 }
 0x139   :  { %262 = vperm.xlu0 %1184, %v173_v47   ;;  %357 = vperm.xlu1 %1185, %v173_v47  }
 0x13d   :  { %1186 = vset.pattern.permute.xlu1 %v1345_v49  ;;  %1187 = vset.pattern.permute.xlu0 %v1346_v50 }
 0x13e   :  { %452 = vperm.xlu1 %1186, %v173_v47   ;;  %547 = vperm.xlu0 %1187, %v173_v47  }
 0x142   :  { %1188 = vset.pattern.permute.xlu1 %v1347_v51  ;;  %1190 = vset.pattern.permute.xlu0 %v1349_v53 }
 0x143   :  { %641 = vperm.xlu1 %1188, %v173_v47   ;;  %831 = vperm.xlu0 %1190, %v173_v47  }
 0x147   :  { %1189 = vset.pattern.permute.xlu1 %v1348_v52  ;;  %1192 = vset.pattern.permute.xlu0 %v1350_v54 }
 0x148   :  { %736 = vperm.xlu1 %1189, %v173_v47  }
 0x14c   :  { %1191 = vset.pattern.permute.xlu1 %v1350_v54  ;;  %v969_v54 = vld [vmem:[%s1527_s5 + $0x5] ss:$0 sm:$0xff] }
 0x14d   :  { %926 = vperm.xlu1 %1191, %v173_v47  }
 0x19f   :  { %v281_v62 = vpop.permute.xlu0 %280  ;;  %v471_v14 = vpop.permute.xlu1 %470 }
 0x1a0   :  { %1037 = vmatmul.mubr.msk.f32.vlgmr.msra.gmra.mrb[2].mxu0 %vm96_vm0, %v281_v62 }
 0x1a1   :  { %1133 = vmatpush3.bf16.msra.mxu0 %v1132_v57  ;;  %1058 = vmatprep.mubr.msk.f32.mxu0 %vm1339_vm1, %v1337_v0 }
 0x1a2   :  { %1134 = vmatprep.subr.bf16.mxu0 %v1338_v1 }
 0x1a3   :  { %v376_v7 = vpop.permute.xlu0 %375  ;;  %v660_v25 = vpop.permute.xlu1 %659 }
 0x1a4   :  { %1048 = vmatmul.mubr.msk.f32.vlgmr.msra.gmra.mrb[2].mxu1 %vm96_vm0, %v376_v7 }
 0x1a5   :  { %1136 = vmatpush3.bf16.msra.mxu0 %v1135_v63  ;;  %1139 = vmatpush3.bf16.msra.mxu1 %v1138_v2  ;;  %v972_v2 = vld [vmem:[%s1527_s5 + $0x6] ss:$0 sm:$0xff] }
 0x1a6   :  { %1143 = vmatprep.subr.bf16.mxu0 %v1338_v1  ;;  %1140 = vmatprep.subr.bf16.mxu1 %v1338_v1 }
 0x1a7   :  { %1069 = vmatprep.mubr.msk.f32.mxu1 %vm1339_vm1, %v1337_v0  ;;  %v755_v27 = vpop.permute.xlu0 %754  ;;  %v850_v28 = vpop.permute.xlu1 %849 }
 0x1a8   :  { %1059 = vmatmul.mubr.msk.f32.vlgmr.msra.gmra.mrb[4].mxu0 %vm96_vm0, %v471_v14 }
 0x1a9   :  { %1142 = vmatpush3.bf16.msra.mxu1 %v1141_v8  ;;  %1145 = vmatpush3.bf16.msra.mxu0 %v1144_v9 }
 0x1aa   :  { %1146 = vmatprep.subr.bf16.mxu0 %v1338_v1  ;;  %1149 = vmatprep.subr.bf16.mxu1 %v1338_v1 }
 0x1ab   :  { %1080 = vmatprep.mubr.msk.f32.mxu0 %vm1339_vm1, %v1337_v0 }
 0x1ac   :  { %1070 = vmatmul.mubr.msk.f32.vlgmr.msra.gmra.mrb[4].mxu1 %vm96_vm0, %v1451_v45 }
 0x1ad   :  { %1148 = vmatpush3.bf16.msra.mxu0 %v1147_v15  ;;  %1151 = vmatpush3.bf16.msra.mxu1 %v1150_v16 }
 0x1ae   :  { %1152 = vmatprep.subr.bf16.mxu1 %v1338_v1  ;;  %1155 = vmatprep.subr.bf16.mxu0 %v1338_v1 }
 0x1af   :  { %1091 = vmatprep.mubr.msk.f32.mxu1 %vm1339_vm1, %v1337_v0 }
 0x1b0   :  { %1081 = vmatmul.mubr.msk.f32.vlgmr.msra.gmra.mrb[6].mxu0 %vm96_vm0, %v660_v25 }
 0x1b1   :  { %1154 = vmatpush3.bf16.msra.mxu1 %v1153_v21  ;;  %1157 = vmatpush3.bf16.msra.mxu0 %v1156_v22 }
 0x1b2   :  { %1158 = vmatprep.subr.bf16.mxu0 %v1338_v1  ;;  %1102 = vmatprep.mubr.msk.f32.mxu0 %vm1339_vm1, %v1337_v0  ;;  %v957_v1 = vld [vmem:[%s1527_s5 + $0x1] ss:$0 sm:$0xff]  ;;  %s1351_s5 = smov [#allocation10]  }
 0x1b3   :  { %s942_s15 = sshll.u32 %s1351_s5, 4  ;;  %s943_s15 = int_to_ptr.vmem [resolvable:$true] %s942_s15 }
 0x1b4   :  { %1092 = vmatmul.mubr.msk.f32.vlgmr.msra.gmra.mrb[6].mxu1 %vm96_vm0, %v755_v27  ;;  %s1299_s16 = scalar_lea.vmem %s943_s15, 128  ;;  %p1304_p5 = scmp.lt.s32.totalorder %s943_s15, %s943_s15 }
 0x1b5   :  { %1160 = vmatpush3.bf16.msra.mxu0 %v1159_v26  ;;  %p1300_p4 = scmp.ne.s32.totalorder %s943_s15, %s1299_s16  ;;  %p1305_p6 = scmp.lt.s32.totalorder %s1299_s16, %s1299_s16 }
 0x1b7   :  { %p1306_p7 = por %p1305_p6, %p1304_p5 }
 0x1b8   :  { %1103 = vmatmul.mubr.msk.f32.vlgmr.msra.gmra.mrb[8].mxu0 %vm96_vm0, %v850_v28  ;;  %v358_v48 = vpop.permute.xlu1 %357  ;;  %v263_v51 = vpop.permute.xlu0 %262 }
 0x1b9   :  { %p1307_p8 = pnand %p1306_p7, %p1300_p4 }
 0x1bd   :  { %v453_v62 = vpop.permute.xlu1 %452  ;;  %v548_v9 = vpop.permute.xlu0 %547 }
 0x1c2   :  { %v642_v14 = vpop.permute.xlu1 %641  ;;  %v832_v27 = vpop.permute.xlu0 %831 }
 0x1c7   :  { %v737_v23 = vpop.permute.xlu1 %736 }
 0x201   :  { %v254_v29 = vpop.f32.mrb[0].mxu1 }
 0x202   :  { %v1027_v30 = vpop.f32.mrb[1].mxu1  ;;  %v255_v32 = vadd.f32 %v954_v31, %v254_v29  ;;  %v927_v31 = vpop.permute.xlu1 %926 }
 0x204   :  { %v258_v33 = vmul.f32 1.442695, %v255_v32 }
 0x206   :  { %1193 = vpow2.f32 %v258_v33 }
 0x210   :  { %v1194_v50 = vpop.eup %1193 }
 0x211   :  { %v265_v57 = vmul.f32 %v1194_v50, %v263_v51 }
 0x273   :  { %v350_v0 = vpop.f32.mrb[2].mxu0 }
 0x274   :  { %v351_v34 = vadd.f32 %v957_v1, %v350_v0  ;;  %v1038_v35 = vpop.f32.mrb[3].mxu0 }
 0x276   :  { %v354_v37 = vmul.f32 1.442695, %v351_v34 }
 0x277   :  { %v445_v38 = vpop.f32.mrb[2].mxu1 }
 0x278   :  { %1195 = vpow2.f32 %v354_v37  ;;  %v446_v39 = vadd.f32 %v960_v36, %v445_v38  ;;  %v1049_v40 = vpop.f32.mrb[3].mxu1 }
 0x27a   :  { %v449_v42 = vmul.f32 1.442695, %v446_v39 }
 0x27b   :  { %v540_v43 = vpop.f32.mrb[4].mxu0 }
 0x27c   :  { %1197 = vpow2.f32 %v449_v42  ;;  %v541_v44 = vadd.f32 %v963_v41, %v540_v43  ;;  %v1060_v45 = vpop.f32.mrb[5].mxu0 }
 0x27e   :  { %v544_v47 = vmul.f32 1.442695, %v541_v44 }
 0x27f   :  { %v634_v49 = vpop.f32.mrb[4].mxu1 }
 0x280   :  { %1199 = vpow2.f32 %v544_v47  ;;  %v635_v52 = vadd.f32 %v966_v46, %v634_v49  ;;  %v1071_v53 = vpop.f32.mrb[5].mxu1 }
 0x282   :  { %v1196_v55 = vpop.eup %1195  ;;  %v638_v56 = vmul.f32 1.442695, %v635_v52 }
 0x283   :  { %v360_v58 = vmul.f32 %v1196_v55, %v358_v48  ;;  %v729_v59 = vpop.f32.mrb[6].mxu0 }
 0x284   :  { %1201 = vpow2.f32 %v638_v56  ;;  %v730_v60 = vadd.f32 %v969_v54, %v729_v59  ;;  %v1082_v61 = vpop.f32.mrb[7].mxu0 }
 0x285   :  { %v361_v63 = vadd.f32 %v360_v58, %v265_v57 }
 0x286   :  { %v1198_v3 = vpop.eup %1197  ;;  %v733_v4 = vmul.f32 1.442695, %v730_v60 }
 0x287   :  { %v455_v5 = vmul.f32 %v1198_v3, %v453_v62  ;;  %v824_v6 = vpop.f32.mrb[6].mxu1 }
 0x288   :  { %1203 = vpow2.f32 %v733_v4  ;;  %v825_v7 = vadd.f32 %v972_v2, %v824_v6  ;;  %v1093_v8 = vpop.f32.mrb[7].mxu1 }
 0x289   :  { %v456_v10 = vadd.f32 %v455_v5, %v361_v63 }
 0x28a   :  { %v1200_v12 = vpop.eup %1199  ;;  %v828_v13 = vmul.f32 1.442695, %v825_v7 }
 0x28b   :  { %v550_v15 = vmul.f32 %v1200_v12, %v548_v9  ;;  %v919_v16 = vpop.f32.mrb[8].mxu0 }
 0x28c   :  { %1205 = vpow2.f32 %v828_v13  ;;  %v920_v17 = vadd.f32 %v975_v11, %v919_v16  ;;  %v1104_v18 = vpop.f32.mrb[9].mxu0 }
 0x28d   :  { %v551_v19 = vadd.f32 %v550_v15, %v456_v10 }
 0x28e   :  { %v1202_v20 = vpop.eup %1201  ;;  %v923_v21 = vmul.f32 1.442695, %v920_v17 }
 0x28f   :  { %v644_v22 = vmul.f32 %v1202_v20, %v642_v14 }
 0x290   :  { %1207 = vpow2.f32 %v923_v21 }
 0x291   :  { %v645_v24 = vadd.f32 %v644_v22, %v551_v19 }
 0x292   :  { %v1204_v25 = vpop.eup %1203 }
 0x293   :  { %v739_v26 = vmul.f32 %v1204_v25, %v737_v23 }
 0x295   :  { %v740_v28 = vadd.f32 %v739_v26, %v645_v24 }
 0x296   :  { %v1206_v29 = vpop.eup %1205 }
 0x297   :  { %v834_v30 = vmul.f32 %v1206_v29, %v832_v27 }
 0x299   :  { %v835_v32 = vadd.f32 %v834_v30, %v740_v28 }
 0x29a   :  { %v1208_v1 = vpop.eup %1207 }
 0x29b   :  { %v929_v33 = vmul.f32 %v1208_v1, %v927_v31 }
 0x29d   :  { %v930_v0 = vadd.f32 %v929_v33, %v835_v32 }
 0x29f   :  { %vm931_vm2 = vcmp.eq.f32.partialorder %v930_v0, 0.0 }
 0x2a0   :  { %v932_v34 = vsel %vm931_vm2, 2.220446e-16, %v930_v0 }
 0x2a1   :  { %1209 = vlog2.f32 %v932_v34 }
 0x2ab   :  { %v1210_v35 = vpop.eup %1209 }
 0x2ac   :  { %v934_v36 = vmul.f32 0.6931472, %v1210_v35 }
 0x2ae   :  { %935 = vst [vmem:[#allocation10] sm:$0xff] %v934_v36 }
 0x2af   :  { %1310 = shalt.err (!%p1307_p8)
}
 0x2b0   :  { %s1311_s2 = scalar_lea.hbm %s1528_s6, 128 }
 0x2b1   :  { %p1312_p9 = scmp.ne.s32.totalorder %s1528_s6, %s1311_s2  ;;  %p1315_p10 = scmp.lt.u32.totalorder %s1311_s2, %s1528_s6 }
 0x2b3   :  { %p1317_p11 = pnand %p1315_p10, %p1312_p9 }
 0x2b5   :  { %1320 = shalt.err (!%p1317_p11)
}
 0x2b6   :  { %945 = dma.vmem_to_hbm [thread:$0]  %s943_s15, 128, %s1528_s6, [#allocation4]  }
 0x2b7   :  { %1327 = dma.done.wait [#allocation4], 128  }
 0x2b8   :  { %1328 = vsyncadd [#allocation4], 4294967168 }
 0x2b9   :  { %949 = vsyncpa [#allocation3], 1 }
 0x2ba   :  { %950 = vsyncpa [#allocation6], 1 }
 0x2bb   :  { %951 = vsyncpa [#allocation9], 1 }
 0x2bc   :  { %952 = vsyncpa [#allocation4], 1 }

</bundles_post_ra>
